<compile_context>
chip_gen: v7x
topology: tpu7x:2x2x1
jax: 0.10.0
libtpu: 0.0.40
codegen_flags: <defaults>
</compile_context>

<pallas_src>
import functools

import jax
import jax.numpy as jnp
from jax import lax
from jax.experimental import pallas as pl
from jax.experimental.pallas import tpu as pltpu

NUM_CLASSES = 4
FEAT_DIM = 3 * 128
WEIGHT_PL = 0.1
MARGIN = 1.0


def _detect_core_splits():
    """2-way core split only on dual-TensorCore chips (v7x); 1 elsewhere."""
    try:
        kind = jax.devices()[0].device_kind.lower()
    except Exception:
        return 1
    return 2 if "v7" in kind else 1


def _center_loss_kernel(x_ref, lab_ref, cneg2t_ref, c2_ref, r_ref,
                        out_ref, acc1_ref, accr_ref,
                        *, n_inner, tile_b, batch, feat_dim, num_classes):
    c = pl.program_id(0)   # core-split index (CORE_PARALLEL on v7x)
    i = pl.program_id(1)   # streaming/reduction index ("arbitrary")

    @pl.when(i == 0)
    def _init():
        acc1_ref[...] = jnp.zeros_like(acc1_ref)
        accr_ref[...] = jnp.zeros_like(accr_ref)

    # Logical rows owned by this grid step (UNclamped, so ragged tails and the
    # duplicate step of an odd 2-core split are fully masked out).
    row = (lax.broadcasted_iota(jnp.int32, (tile_b, 1), 0)
           + (c * n_inner + i) * tile_b)
    valid_b = row < batch                                        # (TB, 1) bool

    # Zero invalid rows BEFORE any math (select, not multiply: undefined VMEM
    # in the ragged region cannot produce Inf/NaN).  Keep native dtype so a
    # bf16 x feeds the MXU in bf16.
    x_raw = x_ref[...]                                           # (TB, D)
    x_t = jnp.where(valid_b, x_raw, jnp.zeros_like(x_raw))
    x = x_t.astype(jnp.float32)

    labels = lab_ref[...]                                        # (TB, 1) int32
    radius = r_ref[0, 0]                                         # scalar f32 (SMEM)

    # ||x||^2 per row (f32).
    x2 = jnp.sum(x * x, axis=1, keepdims=True)                   # (TB, 1)

    # Cross term on the MXU; centers pre-scaled by -2 and pre-transposed to
    # (D, C) in the wrapper, so this is a plain (TB,D)x(D,C) weight-feed.
    xc_neg2 = jnp.dot(x_t, cneg2t_ref[...],
                      preferred_element_type=jnp.float32)        # (TB, C)

    distmat = x2 + c2_ref[...] + xc_neg2                         # (TB, C)

    # One-hot mask and single fused reduction: d = distmat[i, label_i].
    classes = lax.broadcasted_iota(jnp.int32, (tile_b, num_classes), 1)
    mask = (labels == classes).astype(jnp.float32)               # (TB, C)
    d = jnp.sum(distmat * mask, axis=1, keepdims=True)           # (TB, 1)

    valid = valid_b.astype(jnp.float32)

    # torch: clamp(dist*mask, 1e-12, 1e12).sum()  ==  per valid row:
    #   clip(d) + (C-1)*1e-12   (masked-out zeros each clamp to exactly 1e-12)
    tile_loss1 = jnp.sum(
        (jnp.clip(d, 1e-12, 1e12) + (num_classes - 1) * 1e-12) * valid)

    # Hinge term: dis_known = ||x_i - c_{label_i}||^2 / D (guard cancellation).
    dis_known = jnp.maximum(d, 0.0) * (1.0 / feat_dim)           # (TB, 1)
    tile_lossr = jnp.sum(jnp.maximum(dis_known - radius + MARGIN, 0.0) * valid)

    acc1_ref[...] += tile_loss1
    accr_ref[...] += tile_lossr

    @pl.when(i == n_inner - 1)
    def _finalize():
        # Lane-dense (1, 2, 128) slab; every lane of each accumulator holds
        # the same partial sum, the wrapper reads lane 0.
        out_ref[:, 0:1, :] = acc1_ref[...].reshape(1, 1, 128)
        out_ref[:, 1:2, :] = accr_ref[...].reshape(1, 1, 128)


def center_loss(x, centers, labels, radius, *, block_b=2048, num_core_splits=None):
    """Pallas CenterLoss forward.  block_b is the per-step batch tile (rows)."""
    B, D = x.shape
    C = centers.shape[0]
    itemsize = jnp.dtype(x.dtype).itemsize

    # Tiny hoisted preprocessing of the centers (C*D work).
    centers_f32 = centers.astype(jnp.float32)
    c2 = jnp.sum(centers_f32 * centers_f32, axis=1)[None, :]       # (1, C) f32
    centers_neg2_t = (centers_f32 * -2.0).T.astype(x.dtype)        # (D, C), -2 folded once

    labels_2d = labels.astype(jnp.int32).reshape(B, 1)
    radius_2d = radius.astype(jnp.float32).reshape(1, 1)

    # Batch tiling WITHOUT padding x: tile_b is either the whole batch (legal:
    # block dim == full array dim) or a multiple of 8; the last tile may be
    # ragged and is masked in-kernel.
    if B <= block_b:
        tile_b = B
    else:
        tile_b = max(8, (block_b // 8) * 8)
    n_tiles = pl.cdiv(B, tile_b)

    core_splits = (num_core_splits if num_core_splits is not None
                   else _detect_core_splits())
    core_splits = max(1, min(core_splits, n_tiles))
    n_inner = pl.cdiv(n_tiles, core_splits)

    kernel = functools.partial(
        _center_loss_kernel,
        n_inner=n_inner, tile_b=tile_b, batch=B, feat_dim=D, num_classes=C)

    def tile_idx(ci, ii):
        # Clamp so a fully-out-of-range step (odd tile count on the 2-core
        # split) re-reads the last real tile; its rows are masked in-kernel.
        return jnp.minimum(ci * n_inner + ii, n_tiles - 1)

    grid_spec = pltpu.PrefetchScalarGridSpec(
        num_scalar_prefetch=0,
        grid=(core_splits, n_inner),
        in_specs=[
            pl.BlockSpec((tile_b, D), lambda ci, ii: (tile_idx(ci, ii), 0)),   # x tile
            pl.BlockSpec((tile_b, 1), lambda ci, ii: (tile_idx(ci, ii), 0)),   # labels
            pl.BlockSpec((D, C), lambda ci, ii: (0, 0)),                       # -2*centers^T
            pl.BlockSpec((1, C), lambda ci, ii: (0, 0)),                       # ||c||^2
            pl.BlockSpec(memory_space=pltpu.MemorySpace.SMEM),                 # radius
        ],
        out_specs=pl.BlockSpec((1, 2, 128), lambda ci, ii: (ci, 0, 0)),
        scratch_shapes=[
            pltpu.VMEM((1, 128), jnp.float32),   # loss1 partial accumulator
            pltpu.VMEM((1, 128), jnp.float32),   # loss_r partial accumulator
        ],
    )

    # VMEM budget (double-buffered blocks, lane padding included).  Only raise
    # the scoped limit when a big tile needs it; cap below v7x's 64 MiB
    # physical per-TC VMEM.
    est = 2 * (tile_b * D * itemsize          # x double-buffer
               + tile_b * 128 * 4             # labels (lane-padded to 128)
               + D * 128 * itemsize           # (D, C) centers (lane-padded)
               + 8 * 128 * 4)                 # ||c||^2
    est += 2 * 2 * 128 * 4 + 2 * 1 * 128 * 4  # out block + accumulators
    vmem_limit = None
    if est > (12 << 20):
        vmem_limit = min(int(est * 1.5) + (16 << 20), 56 << 20)

    sems = (pltpu.CORE_PARALLEL if core_splits > 1 else pltpu.ARBITRARY,
            pltpu.ARBITRARY)

    cost = pl.CostEstimate(
        flops=2 * B * D * C + 8 * B * D,
        transcendentals=0,
        bytes_accessed=(B * D * itemsize + B * 4 + C * D * 4 + C * 4
                        + core_splits * 2 * 128 * 4))

    partials = pl.pallas_call(
        kernel,
        out_shape=jax.ShapeDtypeStruct((core_splits, 2, 128), jnp.float32),
        grid_spec=grid_spec,
        compiler_params=pltpu.CompilerParams(
            dimension_semantics=sems, vmem_limit_bytes=vmem_limit),
        cost_estimate=cost,
    )(x, labels_2d, centers_neg2_t, c2, radius_2d)

    loss1 = jnp.sum(partials[:, 0, 0]) / B
    loss_r = jnp.sum(partials[:, 1, 0]) / B
    return loss1 + WEIGHT_PL * loss_r


def center_loss_ref(x, centers, labels, radius):
    """Pure-JAX reference mirroring the PyTorch forward exactly."""
    B = x.shape[0]
    C = centers.shape[0]
    distmat = (
        jnp.sum(x ** 2, axis=1, keepdims=True)
        + jnp.sum(centers ** 2, axis=1, keepdims=True).T
        - 2.0 * x @ centers.T
    )
    mask = (labels[:, None] == jnp.arange(C)[None, :]).astype(jnp.float32)
    loss = jnp.sum(jnp.clip(distmat * mask, 1e-12, 1e12)) / B
    center_batch = centers[labels]
    dis_known = jnp.mean((x - center_batch) ** 2, axis=1)
    loss_r = jnp.mean(jnp.maximum(-(radius - dis_known) + MARGIN, 0.0))
    return loss + WEIGHT_PL * loss_r


if __name__ == "__main__":
    key = jax.random.PRNGKey(0)
    k_x, k_c, k_l = jax.random.split(key, 3)

    B = 24
    x = jax.random.normal(k_x, (B, FEAT_DIM), dtype=jnp.float32)
    labels = jax.random.randint(k_l, (B,), 0, NUM_CLASSES, dtype=jnp.int32)

    # deterministic parameter init (module: centers ~ randn, radius filled with 0)
    centers = jax.random.normal(k_c, (NUM_CLASSES, FEAT_DIM), dtype=jnp.float32)
    radius = jnp.zeros((1,), dtype=jnp.float32)

    loss_ref = center_loss_ref(x, centers, labels, radius[0])

    # 1) single tile (tile_b == B), default block size.
    loss = center_loss(x, centers, labels, radius)
    jax.block_until_ready(loss)
    assert jnp.allclose(loss, loss_ref, rtol=1e-5, atol=1e-5), (loss, loss_ref)

    # 2) multi-step streaming accumulation (3 tiles of 8 rows, no padding).
    loss_small = center_loss(x, centers, labels, radius, block_b=8)
    jax.block_until_ready(loss_small)
    assert jnp.allclose(loss_small, loss_ref, rtol=1e-5, atol=1e-5), (loss_small, loss_ref)

    # 3) ragged last tile (B=21 not a multiple of the 8-row tile) exercising
    #    the in-kernel masking of undefined overhang rows.
    B2 = 21
    x2 = x[:B2]
    labels2 = labels[:B2]
    loss_ref2 = center_loss_ref(x2, centers, labels2, radius[0])
    loss2 = center_loss(x2, centers, labels2, radius, block_b=8)
    jax.block_until_ready(loss2)
    assert jnp.allclose(loss2, loss_ref2, rtol=1e-5, atol=1e-5), (loss2, loss_ref2)

    print("KERNEL_OK")
</pallas_src>

<mosaic_0001>
module attributes {stable_mosaic.version = 11 : i64} {
  func.func @_center_loss_kernel(%arg0: i32, %arg1: i32, %arg2: memref<24x384xf32, #tpu.memory_space<vmem>>, %arg3: memref<24x1xi32, #tpu.memory_space<vmem>>, %arg4: memref<384x4xf32, #tpu.memory_space<vmem>>, %arg5: memref<1x4xf32, #tpu.memory_space<vmem>>, %arg6: memref<1x1xf32, #tpu.memory_space<smem>>, %arg7: memref<1x2x128xf32, #tpu.memory_space<vmem>>, %arg8: memref<1x128xf32, #tpu.memory_space<vmem>>, %arg9: memref<1x128xf32, #tpu.memory_space<vmem>>) attributes {dimension_semantics = [#tpu.dimension_semantics<arbitrary>, #tpu.dimension_semantics<arbitrary>], iteration_bounds = array<i64: 1, 1>, scalar_prefetch = 0 : i64, scratch_operands = 2 : i64, tpu.core_type = #tpu.core_type<tc>, window_params = [{transform_indices = @transform_0, window_bounds = array<i64: 24, 384>}, {transform_indices = @transform_1, window_bounds = array<i64: 24, 1>}, {pipeline_mode = #tpu.pipeline_mode<synchronous>, transform_indices = @transform_2, window_bounds = array<i64: 384, 4>}, {pipeline_mode = #tpu.pipeline_mode<synchronous>, transform_indices = @transform_3, window_bounds = array<i64: 1, 4>}, {transform_indices = @transform_4, window_bounds = array<i64: 1, 1>}, {transform_indices = @transform_5, window_bounds = array<i64: 1, 2, 128>}]} {
    %c0_i32 = arith.constant 0 : i32
    %0 = arith.cmpi eq, %arg1, %c0_i32 : i32
    %1 = arith.extui %0 : i1 to i32
    %c0_i32_0 = arith.constant 0 : i32
    %2 = arith.cmpi ne, %1, %c0_i32_0 : i32
    scf.if %2 {
      %cst_33 = arith.constant 0.000000e+00 : f32
      %75 = vector.broadcast %cst_33 : f32 to vector<1x128xf32>
      %c0_34 = arith.constant 0 : index
      %c0_35 = arith.constant 0 : index
      %76 = vector.load %arg8[%c0_34, %c0_35] : memref<1x128xf32, #tpu.memory_space<vmem>>, vector<1x128xf32>
      tpu.vector_store %arg8[%c0_34, %c0_35], %75 {strides = array<i32>} : memref<1x128xf32, #tpu.memory_space<vmem>>, vector<1x128xf32>,
      %cst_36 = arith.constant 0.000000e+00 : f32
      %77 = vector.broadcast %cst_36 : f32 to vector<1x128xf32>
      %c0_37 = arith.constant 0 : index
      %c0_38 = arith.constant 0 : index
      %78 = vector.load %arg9[%c0_37, %c0_38] : memref<1x128xf32, #tpu.memory_space<vmem>>, vector<1x128xf32>
      tpu.vector_store %arg9[%c0_37, %c0_38], %77 {strides = array<i32>} : memref<1x128xf32, #tpu.memory_space<vmem>>, vector<1x128xf32>,
    } else {
    }
    %3 = tpu.iota {dimensions = array<i32: 0>} : vector<24x1xi32>
    %c1_i32 = arith.constant 1 : i32
    %4 = arith.muli %arg0, %c1_i32 : i32
    %5 = arith.addi %4, %arg1 : i32
    %c24_i32 = arith.constant 24 : i32
    %6 = arith.muli %5, %c24_i32 : i32
    %7 = vector.broadcast %6 : i32 to vector<24x1xi32>
    %8 = arith.addi %3, %7 : vector<24x1xi32>
    %c24_i32_1 = arith.constant 24 : i32
    %9 = vector.broadcast %c24_i32_1 : i32 to vector<24x1xi32>
    %10 = arith.cmpi slt, %8, %9 : vector<24x1xi32>
    %c0 = arith.constant 0 : index
    %c0_2 = arith.constant 0 : index
    %11 = vector.load %arg2[%c0, %c0_2] : memref<24x384xf32, #tpu.memory_space<vmem>>, vector<24x384xf32>
    %cst = arith.constant 0.000000e+00 : f32
    %12 = vector.broadcast %cst : f32 to vector<24x384xf32>
    %13 = vector.shape_cast %10 : vector<24x1xi1> to vector<24x1xi1>
    %14 = vector.broadcast %13 : vector<24x1xi1> to vector<24x384xi1>
    %15 = arith.select %14, %11, %12 : vector<24x384xi1>, vector<24x384xf32>
    %c0_3 = arith.constant 0 : index
    %c0_4 = arith.constant 0 : index
    %16 = vector.load %arg3[%c0_3, %c0_4] : memref<24x1xi32, #tpu.memory_space<vmem>>, vector<24x1xi32>
    %c0_5 = arith.constant 0 : index
    %c0_6 = arith.constant 0 : index
    %17 = memref.load %arg6[%c0_5, %c0_6] : memref<1x1xf32, #tpu.memory_space<smem>>
    %18 = arith.mulf %15, %15 : vector<24x384xf32>
    %cst_7 = arith.constant dense<0.000000e+00> : vector<24xf32>
    %19 = vector.multi_reduction <add>, %18, %cst_7 [1] : vector<24x384xf32> to vector<24xf32>
    %20 = vector.shape_cast %19 : vector<24xf32> to vector<24x1xf32>
    %c0_8 = arith.constant 0 : index
    %c0_9 = arith.constant 0 : index
    %21 = vector.load %arg4[%c0_8, %c0_9] : memref<384x4xf32, #tpu.memory_space<vmem>>, vector<384x4xf32>
    %cst_10 = arith.constant dense<0.000000e+00> : vector<24x4xf32>
    %22 = tpu.matmul %15, %21, %cst_10 {dimension_numbers = #tpu.dot_dimension_numbers<[1], [0], [0], [1], [0, 0, 1, 1], [], []>} : vector<24x384xf32>, vector<384x4xf32>, vector<24x4xf32> -> vector<24x4xf32>
    %c0_11 = arith.constant 0 : index
    %c0_12 = arith.constant 0 : index
    %23 = vector.load %arg5[%c0_11, %c0_12] : memref<1x4xf32, #tpu.memory_space<vmem>>, vector<1x4xf32>
    %24 = vector.broadcast %20 : vector<24x1xf32> to vector<24x4xf32>
    %25 = vector.broadcast %23 : vector<1x4xf32> to vector<24x4xf32>
    %26 = arith.addf %24, %25 : vector<24x4xf32>
    %27 = arith.addf %26, %22 : vector<24x4xf32>
    %28 = tpu.iota {dimensions = array<i32: 1>} : vector<24x4xi32>
    %29 = vector.broadcast %16 : vector<24x1xi32> to vector<24x4xi32>
    %30 = arith.cmpi eq, %29, %28 : vector<24x4xi32>
    %31 = arith.extui %30 : vector<24x4xi1> to vector<24x4xi32>
    %32 = arith.sitofp %31 : vector<24x4xi32> to vector<24x4xf32>
    %33 = arith.mulf %27, %32 : vector<24x4xf32>
    %cst_13 = arith.constant dense<0.000000e+00> : vector<24xf32>
    %34 = vector.multi_reduction <add>, %33, %cst_13 [1] : vector<24x4xf32> to vector<24xf32>
    %35 = vector.shape_cast %34 : vector<24xf32> to vector<24x1xf32>
    %36 = arith.extui %10 : vector<24x1xi1> to vector<24x1xi32>
    %37 = arith.sitofp %36 : vector<24x1xi32> to vector<24x1xf32>
    %cst_14 = arith.constant 9.99999996E-13 : f32
    %cst_15 = arith.constant 9.99999995E+11 : f32
    %38 = vector.broadcast %cst_14 : f32 to vector<24x1xf32>
    %39 = arith.maximumf %38, %35 : vector<24x1xf32>
    %40 = vector.broadcast %cst_15 : f32 to vector<24x1xf32>
    %41 = arith.minimumf %40, %39 : vector<24x1xf32>
    %cst_16 = arith.constant 3.000000e-12 : f32
    %42 = vector.broadcast %cst_16 : f32 to vector<24x1xf32>
    %43 = arith.addf %41, %42 : vector<24x1xf32>
    %44 = arith.mulf %43, %37 : vector<24x1xf32>
    %45 = vector.shape_cast %44 : vector<24x1xf32> to vector<1x24x1xf32>
    %cst_17 = arith.constant dense<0.000000e+00> : vector<1xf32>
    %46 = vector.multi_reduction <add>, %45, %cst_17 [1, 2] : vector<1x24x1xf32> to vector<1xf32>
    %47 = vector.shape_cast %46 : vector<1xf32> to vector<1x1x1xf32>
    %48 = vector.extract %47[0, 0, 0] : f32 from vector<1x1x1xf32>
    %cst_18 = arith.constant 0.000000e+00 : f32
    %49 = vector.broadcast %cst_18 : f32 to vector<24x1xf32>
    %50 = arith.maximumf %35, %49 : vector<24x1xf32>
    %cst_19 = arith.constant 0.00260416674 : f32
    %51 = vector.broadcast %cst_19 : f32 to vector<24x1xf32>
    %52 = arith.mulf %50, %51 : vector<24x1xf32>
    %53 = vector.broadcast %17 : f32 to vector<24x1xf32>
    %54 = arith.subf %52, %53 : vector<24x1xf32>
    %cst_20 = arith.constant 1.000000e+00 : f32
    %55 = vector.broadcast %cst_20 : f32 to vector<24x1xf32>
    %56 = arith.addf %54, %55 : vector<24x1xf32>
    %cst_21 = arith.constant 0.000000e+00 : f32
    %57 = vector.broadcast %cst_21 : f32 to vector<24x1xf32>
    %58 = arith.maximumf %56, %57 : vector<24x1xf32>
    %59 = arith.mulf %58, %37 : vector<24x1xf32>
    %60 = vector.shape_cast %59 : vector<24x1xf32> to vector<1x24x1xf32>
    %cst_22 = arith.constant dense<0.000000e+00> : vector<1xf32>
    %61 = vector.multi_reduction <add>, %60, %cst_22 [1, 2] : vector<1x24x1xf32> to vector<1xf32>
    %62 = vector.shape_cast %61 : vector<1xf32> to vector<1x1x1xf32>
    %63 = vector.extract %62[0, 0, 0] : f32 from vector<1x1x1xf32>
    %c0_23 = arith.constant 0 : index
    %c0_24 = arith.constant 0 : index
    %64 = vector.load %arg8[%c0_23, %c0_24] : memref<1x128xf32, #tpu.memory_space<vmem>>, vector<1x128xf32>
    %65 = vector.broadcast %48 : f32 to vector<1x128xf32>
    %66 = arith.addf %64, %65 : vector<1x128xf32>
    %c0_25 = arith.constant 0 : index
    %c0_26 = arith.constant 0 : index
    %67 = vector.load %arg8[%c0_25, %c0_26] : memref<1x128xf32, #tpu.memory_space<vmem>>, vector<1x128xf32>
    tpu.vector_store %arg8[%c0_25, %c0_26], %66 {strides = array<i32>} : memref<1x128xf32, #tpu.memory_space<vmem>>, vector<1x128xf32>,
    %c0_27 = arith.constant 0 : index
    %c0_28 = arith.constant 0 : index
    %68 = vector.load %arg9[%c0_27, %c0_28] : memref<1x128xf32, #tpu.memory_space<vmem>>, vector<1x128xf32>
    %69 = vector.broadcast %63 : f32 to vector<1x128xf32>
    %70 = arith.addf %68, %69 : vector<1x128xf32>
    %c0_29 = arith.constant 0 : index
    %c0_30 = arith.constant 0 : index
    %71 = vector.load %arg9[%c0_29, %c0_30] : memref<1x128xf32, #tpu.memory_space<vmem>>, vector<1x128xf32>
    tpu.vector_store %arg9[%c0_29, %c0_30], %70 {strides = array<i32>} : memref<1x128xf32, #tpu.memory_space<vmem>>, vector<1x128xf32>,
    %c0_i32_31 = arith.constant 0 : i32
    %72 = arith.cmpi eq, %arg1, %c0_i32_31 : i32
    %73 = arith.extui %72 : i1 to i32
    %c0_i32_32 = arith.constant 0 : i32
    %74 = arith.cmpi ne, %73, %c0_i32_32 : i32
    scf.if %74 {
      %c0_33 = arith.constant 0 : index
      %c0_34 = arith.constant 0 : index
      %75 = vector.load %arg8[%c0_33, %c0_34] : memref<1x128xf32, #tpu.memory_space<vmem>>, vector<1x128xf32>
      %76 = vector.shape_cast %75 : vector<1x128xf32> to vector<1x1x128xf32>
      %c0_35 = arith.constant 0 : index
      %c0_36 = arith.constant 0 : index
      %c0_37 = arith.constant 0 : index
      %77 = vector.load %arg7[%c0_35, %c0_36, %c0_37] : memref<1x2x128xf32, #tpu.memory_space<vmem>>, vector<1x1x128xf32>
      tpu.vector_store %arg7[%c0_35, %c0_36, %c0_37], %76 {strides = array<i32>} : memref<1x2x128xf32, #tpu.memory_space<vmem>>, vector<1x1x128xf32>,
      %c0_38 = arith.constant 0 : index
      %c0_39 = arith.constant 0 : index
      %78 = vector.load %arg9[%c0_38, %c0_39] : memref<1x128xf32, #tpu.memory_space<vmem>>, vector<1x128xf32>
      %79 = vector.shape_cast %78 : vector<1x128xf32> to vector<1x1x128xf32>
      %c0_40 = arith.constant 0 : index
      %c1 = arith.constant 1 : index
      %c0_41 = arith.constant 0 : index
      %80 = vector.load %arg7[%c0_40, %c1, %c0_41] : memref<1x2x128xf32, #tpu.memory_space<vmem>>, vector<1x1x128xf32>
      tpu.vector_store %arg7[%c0_40, %c1, %c0_41], %79 {strides = array<i32>} : memref<1x2x128xf32, #tpu.memory_space<vmem>>, vector<1x1x128xf32>,
    } else {
    }
    return
  }
  func.func @transform_0(%arg0: i32, %arg1: i32) -> (i32, i32) {
    %c1_i32 = arith.constant 1 : i32
    %0 = arith.muli %arg0, %c1_i32 : i32
    %1 = arith.addi %0, %arg1 : i32
    %c0_i32 = arith.constant 0 : i32
    %2 = arith.minsi %1, %c0_i32 : i32
    %c0_i32_0 = arith.constant 0 : i32
    %c0_i32_1 = arith.constant 0 : i32
    return %2, %c0_i32_0 : i32, i32
  }
  func.func @transform_1(%arg0: i32, %arg1: i32) -> (i32, i32) {
    %c1_i32 = arith.constant 1 : i32
    %0 = arith.muli %arg0, %c1_i32 : i32
    %1 = arith.addi %0, %arg1 : i32
    %c0_i32 = arith.constant 0 : i32
    %2 = arith.minsi %1, %c0_i32 : i32
    %c0_i32_0 = arith.constant 0 : i32
    %c0_i32_1 = arith.constant 0 : i32
    return %2, %c0_i32_0 : i32, i32
  }
  func.func @transform_2(%arg0: i32, %arg1: i32) -> (i32, i32) {
    %c0_i32 = arith.constant 0 : i32
    %c0_i32_0 = arith.constant 0 : i32
    %c0_i32_1 = arith.constant 0 : i32
    return %c0_i32, %c0_i32_0 : i32, i32
  }
  func.func @transform_3(%arg0: i32, %arg1: i32) -> (i32, i32) {
    %c0_i32 = arith.constant 0 : i32
    %c0_i32_0 = arith.constant 0 : i32
    %c0_i32_1 = arith.constant 0 : i32
    return %c0_i32, %c0_i32_0 : i32, i32
  }
  func.func @transform_4(%arg0: i32, %arg1: i32) -> (i32, i32) {
    %c0_i32 = arith.constant 0 : i32
    %c0_i32_0 = arith.constant 0 : i32
    %c0_i32_1 = arith.constant 0 : i32
    return %c0_i32, %c0_i32_0 : i32, i32
  }
  func.func @transform_5(%arg0: i32, %arg1: i32) -> (i32, i32, i32) {
    %c0_i32 = arith.constant 0 : i32
    %c0_i32_0 = arith.constant 0 : i32
    %c0_i32_1 = arith.constant 0 : i32
    return %arg0, %c0_i32, %c0_i32_0 : i32, i32, i32
  }
}

</mosaic_0001>

<bundles_post_ra>
// kernel: tpu_custom_call.1
= control target key start
LH: loop header
LB: loop body
LE: loop exit
PB: predicated region body
PF: predicated region fallthrough
CT: control target
= control target key end

     0   :  { %v711_v5 = vmov 0.0|0.0   ;;  %vm712_vm0 = vmmov 0   ;;  %v713_v8 = vmov 0.0   ;;  %v714_v14 = vmov 0   ;;  %s972_s0 = inlined_call_operand.vmem [shape: f32[24,384], index: 0, kind: input, shape index: {}]   ;;  %s973_s1 = inlined_call_operand.vmem [shape: s32[24,1], index: 1, kind: input, shape index: {}]   ;;  %s974_s2 = inlined_call_operand.vmem [shape: f32[384,4], index: 2, kind: input, shape index: {}]   ;;  %s975_s3 = inlined_call_operand.vmem [shape: f32[1,4], index: 3, kind: input, shape index: {}]   ;;  %s976_s4 = inlined_call_operand.<no memory space> [shape: f32[1,1], index: 4, kind: input, shape index: {}]   ;;  %s977_s5 = inlined_call_operand.hbm [shape: f32[1,2,128], index: 5, kind: output, shape index: {}]  }
   0x1   :  { %v173_v0 = vld [vmem:[%s974_s2 + $0x80] sm:$0xff]  ;;  %v174_v1 = vld [vmem:[%s974_s2 + $0x88] sm:$0xff]  ;;  %652 = vmatprep.subr.bf16.mxu1 %v711_v5  ;;  %611 = vmatprep.mubr.msk.f32.mxu1 %vm712_vm0, %v713_v8  ;;  %93 = vst [vmem:[#allocation2] sm:$0x1] %v713_v8  ;;  %94 = vst [vmem:[#allocation3] sm:$0x1] %v713_v8 }
   0x2   :  { %v157_v2 = vld [vmem:[%s974_s2] sm:$0xff]  ;;  %v620_v3 = vpack.c.bf16 %v174_v1, %v173_v0  ;;  %v158_v4 = vld [vmem:[%s974_s2 + $0x8] sm:$0xff]  ;;  %v175_v11 = vld [vmem:[%s974_s2 + $0x90] sm:$0xff]  ;;  %685 = vset.pattern.permute.xlu1 %v714_v14  ;;  %686 = vset.pattern.permute.xlu0 %v714_v14 }
   0x3   :  { %v189_v6 = vld [vmem:[%s974_s2 + $0x100] sm:$0xff]  ;;  %v190_v7 = vld [vmem:[%s974_s2 + $0x108] sm:$0xff]  ;;  %v622_v9 = vpack.c.bf16 %v158_v4, %v157_v2  ;;  %v176_v12 = vld [vmem:[%s974_s2 + $0x98] sm:$0xff] }
   0x4   :  { %v653_v10 = vpack.c.bf16 %v190_v7, %v189_v6  ;;  %v159_v13 = vld [vmem:[%s974_s2 + $0x10] sm:$0xff]  ;;  %621 = vmatprep.subr.bf16.mxu0 %v620_v3  ;;  %v624_v15 = vpack.c.bf16 %v176_v12, %v175_v11  ;;  %v160_v16 = vld [vmem:[%s974_s2 + $0x18] sm:$0xff]  ;;  %v177_v21 = vld [vmem:[%s974_s2 + $0xa0] sm:$0xff] }
   0x5   :  { %v191_v17 = vld [vmem:[%s974_s2 + $0x110] sm:$0xff]  ;;  %v192_v18 = vld [vmem:[%s974_s2 + $0x118] sm:$0xff]  ;;  %623 = vmatpush3.bf16.msra.mxu0 %v622_v9  ;;  %v626_v19 = vpack.c.bf16 %v160_v16, %v159_v13  ;;  %v178_v22 = vld [vmem:[%s974_s2 + $0xa8] sm:$0xff] }
   0x6   :  { %654 = vmatpush3.bf16.msra.mxu1 %v653_v10  ;;  %v656_v20 = vpack.c.bf16 %v192_v18, %v191_v17  ;;  %v161_v23 = vld [vmem:[%s974_s2 + $0x20] sm:$0xff]  ;;  %625 = vmatprep.subr.bf16.mxu0 %v624_v15  ;;  %v628_v24 = vpack.c.bf16 %v178_v22, %v177_v21  ;;  %v162_v25 = vld [vmem:[%s974_s2 + $0x28] sm:$0xff]  ;;  %v179_v28 = vld [vmem:[%s974_s2 + $0xb0] sm:$0xff] }
   0x7   :  { %655 = vmatprep.subr.bf16.mxu1 %v711_v5  ;;  %v193_v26 = vld [vmem:[%s974_s2 + $0x120] sm:$0xff]  ;;  %v194_v27 = vld [vmem:[%s974_s2 + $0x128] sm:$0xff]  ;;  %v180_v29 = vld [vmem:[%s974_s2 + $0xb8] sm:$0xff]  ;;  %v630_v30 = vpack.c.bf16 %v162_v25, %v161_v23 }
   0x8   :  { %v659_v31 = vpack.c.bf16 %v194_v27, %v193_v26  ;;  %v163_v32 = vld [vmem:[%s974_s2 + $0x30] sm:$0xff]  ;;  %v632_v33 = vpack.c.bf16 %v180_v29, %v179_v28  ;;  %v164_v34 = vld [vmem:[%s974_s2 + $0x38] sm:$0xff]  ;;  %v181_v37 = vld [vmem:[%s974_s2 + $0xc0] sm:$0xff] }
   0x9   :  { %627 = vmatpush3.bf16.msra.mxu0 %v626_v19  ;;  %v195_v35 = vld [vmem:[%s974_s2 + $0x130] sm:$0xff]  ;;  %v196_v36 = vld [vmem:[%s974_s2 + $0x138] sm:$0xff]  ;;  %v182_v38 = vld [vmem:[%s974_s2 + $0xc8] sm:$0xff]  ;;  %v634_v39 = vpack.c.bf16 %v164_v34, %v163_v32 }
   0xa   :  { %657 = vmatpush3.bf16.msra.mxu1 %v656_v20  ;;  %629 = vmatprep.subr.bf16.mxu0 %v628_v24  ;;  %v662_v40 = vpack.c.bf16 %v196_v36, %v195_v35  ;;  %v165_v41 = vld [vmem:[%s974_s2 + $0x40] sm:$0xff]  ;;  %v636_v42 = vpack.c.bf16 %v182_v38, %v181_v37  ;;  %v166_v43 = vld [vmem:[%s974_s2 + $0x48] sm:$0xff]  ;;  %v183_v46 = vld [vmem:[%s974_s2 + $0xd0] sm:$0xff] }
   0xb   :  { %658 = vmatprep.subr.bf16.mxu1 %v711_v5  ;;  %v197_v44 = vld [vmem:[%s974_s2 + $0x140] sm:$0xff]  ;;  %v198_v45 = vld [vmem:[%s974_s2 + $0x148] sm:$0xff]  ;;  %v184_v47 = vld [vmem:[%s974_s2 + $0xd8] sm:$0xff]  ;;  %v638_v53 = vpack.c.bf16 %v166_v43, %v165_v41 }
   0xc   :  { %v167_v48 = vld [vmem:[%s974_s2 + $0x50] sm:$0xff]  ;;  %v168_v49 = vld [vmem:[%s974_s2 + $0x58] sm:$0xff]  ;;  %v109_v52 = vld [vmem:[%s972_s0 + $0x8] sm:$0xff]  ;;  %v665_v54 = vpack.c.bf16 %v198_v45, %v197_v44  ;;  %v640_v60 = vpack.c.bf16 %v184_v47, %v183_v46 }
   0xd   :  { %631 = vmatpush3.bf16.msra.mxu0 %v630_v30  ;;  %v199_v50 = vld [vmem:[%s974_s2 + $0x150] sm:$0xff]  ;;  %v200_v51 = vld [vmem:[%s974_s2 + $0x158] sm:$0xff]  ;;  %v185_v55 = vld [vmem:[%s974_s2 + $0xe0] sm:$0xff]  ;;  %v137_v57 = vmul.f32 %v109_v52, %v109_v52  ;;  %269 = vmatprep.mubr.f32.mxu0 %v109_v52  ;;  %v642_v14 = vpack.c.bf16 %v168_v49, %v167_v48 }
   0xe   :  { %660 = vmatpush3.bf16.msra.mxu1 %v659_v31  ;;  %633 = vmatprep.subr.bf16.mxu0 %v632_v33  ;;  %v186_v56 = vld [vmem:[%s974_s2 + $0xe8] sm:$0xff]  ;;  %v108_v58 = vld [vmem:[%s972_s0] sm:$0xff]  ;;  %v110_v59 = vld [vmem:[%s972_s0 + $0x10] sm:$0xff]  ;;  %v668_v15 = vpack.c.bf16 %v200_v51, %v199_v50 }
   0xf   :  { %661 = vmatprep.subr.bf16.mxu1 %v711_v5  ;;  %v136_v61 = vmul.f32 %v108_v58, %v108_v58  ;;  %v112_v62 = vld [vmem:[%s972_s0 + $0x20] sm:$0xff]  ;;  %v111_v63 = vld [vmem:[%s972_s0 + $0x18] sm:$0xff]  ;;  %v113_v0 = vld [vmem:[%s972_s0 + $0x28] sm:$0xff]  ;;  %v138_v1 = vmul.f32 %v110_v59, %v110_v59 }
  0x10   :  { %v140_v2 = vmul.f32 %v112_v62, %v112_v62  ;;  %v139_v3 = vmul.f32 %v111_v63, %v111_v63  ;;  %v141_v4 = vmul.f32 %v113_v0, %v113_v0  ;;  %v115_v6 = vld [vmem:[%s972_s0 + $0x38] sm:$0xff]  ;;  %v114_v7 = vld [vmem:[%s972_s0 + $0x30] sm:$0xff]  ;;  %v116_v9 = vld [vmem:[%s972_s0 + $0x40] sm:$0xff] }
  0x11   :  { %635 = vmatpush3.bf16.msra.mxu0 %v634_v39  ;;  %v143_v10 = vmul.f32 %v115_v6, %v115_v6  ;;  %v142_v11 = vmul.f32 %v114_v7, %v114_v7  ;;  %v145_v12 = vadd.f32 %v137_v57, %v136_v61  ;;  %v144_v13 = vmul.f32 %v116_v9, %v116_v9  ;;  %v169_v16 = vld [vmem:[%s974_s2 + $0x60] sm:$0xff] }
  0x12   :  { %663 = vmatpush3.bf16.msra.mxu1 %v662_v40  ;;  %637 = vmatprep.subr.bf16.mxu0 %v636_v42  ;;  %v149_v17 = vadd.f32 %v140_v2, %v139_v3 }
  0x13   :  { %664 = vmatprep.subr.bf16.mxu1 %v711_v5 }
  0x15   :  { %639 = vmatpush3.bf16.msra.mxu0 %v638_v53 }
  0x16   :  { %666 = vmatpush3.bf16.msra.mxu1 %v665_v54 }
  0x17   :  { %11 = vsyncpa [#allocation6], 0  ;;  %641 = vmatprep.subr.bf16.mxu0 %v640_v60  ;;  %667 = vmatprep.subr.bf16.mxu1 %v711_v5  ;;  %v644_v18 = vpack.c.bf16 %v186_v56, %v185_v55  ;;  %v170_v19 = vld [vmem:[%s974_s2 + $0x68] sm:$0xff]  ;;  %v201_v20 = vld [vmem:[%s974_s2 + $0x160] sm:$0xff]  ;;  %v146_v22 = vadd.f32 %v145_v12, %v138_v1  ;;  %v153_v23 = vadd.f32 %v143_v10, %v142_v11  ;;  %v378_v41 = vlaneseq  ;;  %s715_s14 = smov [#allocation5]  }
  0x18   :  { %v202_v21 = vld [vmem:[%s974_s2 + $0x168] sm:$0xff]  ;;  %v187_v24 = vld [vmem:[%s974_s2 + $0xf0] sm:$0xff]  ;;  %v188_v25 = vld [vmem:[%s974_s2 + $0xf8] sm:$0xff]  ;;  %v150_v27 = vadd.f32 %v149_v17, %v141_v4  ;;  %v646_v28 = vpack.c.bf16 %v170_v19, %v169_v16  ;;  %vm401_vm3 = vcmask 31744   ;;  %vm426_vm5 = vcmask 7168   ;;  %s495_s0 = sshll.u32 %s715_s14, 4  ;;  %s496_s0 = int_to_ptr.vmem [resolvable:$true] %s495_s0 }
  0x19   :  { %147 = vadd.xlane.f32.xlu0 %v146_v22  ;;  %v154_v26 = vadd.f32 %v153_v23, %v144_v13  ;;  %643 = vmatpush3.bf16.msra.mxu0 %v642_v14  ;;  %v671_v29 = vpack.c.bf16 %v202_v21, %v201_v20  ;;  %v171_v30 = vld [vmem:[%s974_s2 + $0x70] sm:$0xff]  ;;  %v648_v31 = vpack.c.bf16 %v188_v25, %v187_v24  ;;  %v172_v32 = vld [vmem:[%s974_s2 + $0x78] sm:$0xff]  ;;  %v132_v37 = vld [vmem:[%s973_s1] sm:$0xff]  ;;  %v379_v42 = vand.u32 127, %v378_v41  ;;  %s687_s15 = scalar_lea.vmem %s496_s0, 32  ;;  %p692_p1 = scmp.lt.s32.totalorder %s496_s0, %s496_s0 }
  0x1a   :  { %669 = vmatpush3.bf16.msra.mxu1 %v668_v15  ;;  %645 = vmatprep.subr.bf16.mxu0 %v644_v18  ;;  %v203_v33 = vld [vmem:[%s974_s2 + $0x170] sm:$0xff]  ;;  %v204_v34 = vld [vmem:[%s974_s2 + $0x178] sm:$0xff]  ;;  %v650_v35 = vpack.c.bf16 %v172_v32, %v171_v30  ;;  %v133_v38 = vld [vmem:[%s973_s1 + $0x8] sm:$0xff]  ;;  %v447_v22 = vstv %s976_s4  ;;  %p688_p0 = scmp.ne.s32.totalorder %s496_s0, %s687_s15  ;;  %p693_p2 = scmp.lt.s32.totalorder %s687_s15, %s687_s15 }
  0x1b   :  { %670 = vmatprep.subr.bf16.mxu1 %v711_v5  ;;  %155 = vadd.xlane.f32.xlu1 %v154_v26  ;;  %v674_v36 = vpack.c.bf16 %v204_v34, %v203_v33  ;;  %v515_v47 = vld [vmem:[%s975_s3] ss:$0 sm:$0xff] }
  0x1c   :  { %p694_p3 = por %p693_p2, %p692_p1 }
  0x1d   :  { %151 = vadd.xlane.f32.xlu0 %v150_v27  ;;  %647 = vmatpush3.bf16.msra.mxu0 %v646_v28 }
  0x1e   :  { %672 = vmatpush3.bf16.msra.mxu1 %v671_v29  ;;  %649 = vmatprep.subr.bf16.mxu0 %v648_v31  ;;  %p695_p4 = pnand %p694_p3, %p688_p0 }
  0x1f   :  { %673 = vmatprep.subr.bf16.mxu1 %v711_v5  ;;  %v134_v5 = vld [vmem:[%s973_s1 + $0x10] sm:$0xff] }
  0x21   :  { %651 = vmatpush3.bf16.msra.mxu0 %v650_v35 }
  0x22   :  { %675 = vmatpush3.bf16.msra.mxu1 %v674_v36 }
  0x24   :  { %270 = vmatmul.mubr.f32.vlgmr.msra.gmra.mrb[0].mxu0 %v108_v58 }
  0x25   :  { %612 = vmatmul.mubr.f32.vlgmr.msra.gmra.mrb[0].mxu1 %v110_v59  ;;  %274 = vmatprep.mubr.f32.mxu0 %v112_v62 }
  0x26   :  { %614 = vmatprep.mubr.msk.f32.mxu1 %vm712_vm0, %v713_v8 }
  0x28   :  { %275 = vmatmul.mubr.f32.gmra.mrb[2].mxu0 %v111_v63 }
  0x29   :  { %615 = vmatmul.mubr.f32.gmra.mrb[2].mxu1 %v113_v0  ;;  %279 = vmatprep.mubr.f32.mxu0 %v115_v6 }
  0x2a   :  { %617 = vmatprep.mubr.msk.f32.mxu1 %vm712_vm0, %v713_v8 }
  0x2c   :  { %280 = vmatmul.mubr.f32.gmra.mrb[4].mxu0 %v114_v7  ;;  %381 = vperm.xlu1 %685, %v132_v37  }
  0x2d   :  { %618 = vmatmul.mubr.f32.gmra.mrb[4].mxu1 %v116_v9 }
  0x30   :  { %387 = vperm.xlu1 %685, %v134_v5  }
  0x33   :  { %384 = vperm.xlu0 %686, %v133_v38  }
  0xa6   :  { %v148_v39 = vpop.xlane.xlu0 %147 }
  0xa7   :  { %v372_v52 = vadd.f32 %v515_v47, %v148_v39 }
  0xa8   :  { %v156_v40 = vpop.xlane.xlu1 %155 }
  0xa9   :  { %v374_v11 = vadd.f32 %v515_v47, %v156_v40 }
  0xaa   :  { %v152_v43 = vpop.xlane.xlu0 %151 }
  0xab   :  { %v373_v62 = vadd.f32 %v515_v47, %v152_v43 }
  0xac   :  { %v382_v44 = vpop.permute.xlu1 %381 }
  0xad   :  { %vm389_vm1 = vcmp.eq.s32.totalorder %v382_v44, %v379_v42 }
  0xae   :  { %v516_v56 = vsel %vm389_vm1, 1.0, %v713_v8 }
  0xb0   :  { %v388_v61 = vpop.permute.xlu1 %387 }
  0xb1   :  { %vm391_vm4 = vcmp.eq.s32.totalorder %v388_v61, %v379_v42 }
  0xb2   :  { %v385_v51 = vpop.permute.xlu0 %384  ;;  %v518_v16 = vsel %vm391_vm4, 1.0, %v713_v8 }
  0xb3   :  { %vm390_vm2 = vcmp.eq.s32.totalorder %v385_v51, %v379_v42 }
  0xb4   :  { %v517_v4 = vsel %vm390_vm2, 1.0, %v713_v8 }
  0xf7   :  { %v551_v45 = vpop.f32.mrb[0].mxu0 }
  0xf8   :  { %v351_v46 = vpop.f32.mrb[0].mxu1  ;;  %v552_v48 = vpop.f32.mrb[1].mxu0 }
  0xf9   :  { %v613_v49 = vpop.f32.mrb[1].mxu1  ;;  %v553_v50 = vadd.f32 %v552_v48, %v551_v45 }
  0xfb   :  { %v352_v53 = vadd.f32 %v553_v50, %v351_v46  ;;  %v554_v54 = vpop.f32.mrb[2].mxu0 }
  0xfc   :  { %v356_v55 = vpop.f32.mrb[2].mxu1  ;;  %v555_v57 = vpop.f32.mrb[3].mxu0 }
  0xfd   :  { %v616_v58 = vpop.f32.mrb[3].mxu1  ;;  %v375_v59 = vadd.f32 %v372_v52, %v352_v53  ;;  %v556_v60 = vadd.f32 %v555_v57, %v554_v54 }
  0xff   :  { %v357_v63 = vadd.f32 %v556_v60, %v356_v55  ;;  %v557_v0 = vpop.f32.mrb[4].mxu0  ;;  %v398_v2 = vmul.f32 %v516_v56, %v375_v59 }
 0x100   :  { %v361_v1 = vpop.f32.mrb[4].mxu1  ;;  %v558_v3 = vpop.f32.mrb[5].mxu0 }
 0x101   :  { %v619_v6 = vpop.f32.mrb[5].mxu1  ;;  %v376_v7 = vadd.f32 %v373_v62, %v357_v63  ;;  %v559_v9 = vadd.f32 %v558_v3, %v557_v0  ;;  %v402_v10 = vsel %vm401_vm3, %v398_v2, 0.0 }
 0x102   :  { %403 = vadd.xlane.f32.xlu1 %v402_v10  ;;  %v474_v6 = vld [vmem:[#allocation2] sm:$0x1]  ;;  %v478_v10 = vld [vmem:[#allocation3] sm:$0x1] }
 0x103   :  { %v362_v12 = vadd.f32 %v559_v9, %v361_v1  ;;  %v399_v13 = vmul.f32 %v517_v4, %v376_v7 }
 0x105   :  { %v377_v14 = vadd.f32 %v374_v11, %v362_v12  ;;  %v405_v15 = vsel %vm401_vm3, %v399_v13, 0.0 }
 0x106   :  { %406 = vadd.xlane.f32.xlu0 %v405_v15 }
 0x107   :  { %v400_v17 = vmul.f32 %v518_v16, %v377_v14 }
 0x109   :  { %v408_v18 = vsel %vm401_vm3, %v400_v17, 0.0 }
 0x10a   :  { %409 = vadd.xlane.f32.xlu1 %v408_v18 }
 0x18f   :  { %v404_v19 = vpop.xlane.xlu1 %403 }
 0x190   :  { %v414_v20 = vmax.f32 %v404_v19, 1e-12  ;;  %v441_v21 = vmax.f32 %v404_v19, 0.0 }
 0x192   :  { %v444_v23 = vmul.f32 0.0026041667, %v441_v21  ;;  %v417_v25 = vmin.f32 %v414_v20, 1e+12 }
 0x193   :  { %v407_v24 = vpop.xlane.xlu0 %406 }
 0x194   :  { %v415_v26 = vmax.f32 %v407_v24, 1e-12  ;;  %v442_v27 = vmax.f32 %v407_v24, 0.0  ;;  %v448_v28 = vsub.f32 %v444_v23, %v447_v22  ;;  %v420_v31 = vadd.f32 3e-12, %v417_v25 }
 0x196   :  { %v418_v29 = vmin.f32 %v415_v26, 1e+12  ;;  %v445_v8 = vmul.f32 0.0026041667, %v442_v27  ;;  %v451_v35 = vadd.f32 1.0, %v448_v28  ;;  %v427_v42 = vsel %vm426_vm5, %v420_v31, 0.0 }
 0x197   :  { %v410_v30 = vpop.xlane.xlu1 %409 }
 0x198   :  { %v421_v32 = vadd.f32 3e-12, %v418_v29  ;;  %v449_v33 = vsub.f32 %v445_v8, %v447_v22  ;;  %v416_v34 = vmax.f32 %v410_v30, 1e-12  ;;  %v443_v36 = vmax.f32 %v410_v30, 0.0 }
 0x199   :  { %v454_v43 = vmax.f32 %v451_v35, 0.0 }
 0x19a   :  { %v428_v37 = vsel %vm426_vm5, %v421_v32, 0.0  ;;  %v452_v5 = vadd.f32 1.0, %v449_v33  ;;  %v419_v38 = vmin.f32 %v416_v34, 1e+12  ;;  %v446_v39 = vmul.f32 0.0026041667, %v443_v36 }
 0x19b   :  { %v429_v45 = vadd.f32 %v428_v37, %v427_v42  ;;  %v460_v51 = vsel %vm426_vm5, %v454_v43, 0.0 }
 0x19c   :  { %v455_v40 = vmax.f32 %v452_v5, 0.0  ;;  %v422_v41 = vadd.f32 3e-12, %v419_v38  ;;  %v450_v44 = vsub.f32 %v446_v39, %v447_v22 }
 0x19e   :  { %v430_v46 = vsel %vm426_vm5, %v422_v41, 0.0  ;;  %v453_v47 = vadd.f32 1.0, %v450_v44  ;;  %v461_v49 = vsel %vm426_vm5, %v455_v40, 0.0 }
 0x19f   :  { %v431_v48 = vadd.f32 %v430_v46, %v429_v45  ;;  %v462_v52 = vadd.f32 %v461_v49, %v460_v51 }
 0x1a0   :  { %v456_v50 = vmax.f32 %v453_v47, 0.0 }
 0x1a1   :  { %432 = vadd.xlane.f32.xlu1 %v431_v48 }
 0x1a2   :  { %v463_v53 = vsel %vm426_vm5, %v456_v50, 0.0 }
 0x1a3   :  { %v464_v54 = vadd.f32 %v463_v53, %v462_v52 }
 0x1a5   :  { %465 = vadd.xlane.f32.xlu1 %v464_v54 }
 0x22e   :  { %v433_v55 = vpop.xlane.xlu1 %432 }
 0x22f   :  { %v434_v56 = vrot.slane %v433_v55, 4 }
 0x231   :  { %v435_v57 = vadd.f32 %v434_v56, %v433_v55 }
 0x232   :  { %v466_v59 = vpop.xlane.xlu1 %465 }
 0x233   :  { %v436_v58 = vrot.slane %v435_v57, 2  ;;  %v467_v60 = vrot.slane %v466_v59, 4 }
 0x235   :  { %v437_v61 = vadd.f32 %v436_v58, %v435_v57  ;;  %v468_v62 = vadd.f32 %v467_v60, %v466_v59 }
 0x237   :  { %v438_v63 = vrot.slane %v437_v61, 1  ;;  %v469_v0 = vrot.slane %v468_v62, 2 }
 0x239   :  { %v439_v1 = vadd.f32 %v438_v63, %v437_v61  ;;  %v470_v2 = vadd.f32 %v469_v0, %v468_v62 }
 0x23b   :  { %676 = vpush %v439_v1  ;;  %v471_v3 = vrot.slane %v470_v2, 1 }
 0x23d   :  { %v472_v4 = vadd.f32 %v471_v3, %v470_v2 }
 0x23f   :  { %678 = vpush %v472_v4 }
 0x26c   :  { %s677_s4 = spop %676 }
 0x26d   :  { %v475_v7 = vstv %s677_s4 }
 0x26e   :  { %v476_v9 = vadd.f32 %v475_v7, %v474_v6 }
 0x270   :  { %477 = vst [vmem:[#allocation2] sm:$0x1] %v476_v9  ;;  %s679_s13 = spop %678 }
 0x271   :  { %v479_v11 = vstv %s679_s13 }
 0x272   :  { %v480_v12 = vadd.f32 %v479_v11, %v478_v10 }
 0x274   :  { %481 = vst [vmem:[#allocation3] sm:$0x1] %v480_v12 }
 0x277   :  { %v485_v13 = vld [vmem:[#allocation2] sm:$0x1] }
 0x278   :  { %486 = vst [vmem:[#allocation5] sm:$0x1] %v485_v13 }
 0x27b   :  { %v487_v14 = vld [vmem:[#allocation3] sm:$0x1] }
 0x27c   :  { %488 = vst [vmem:[#allocation5 + $0x1] sm:$0x1] %v487_v14 }
 0x27d   :  { %698 = shalt.err (!%p695_p4)
}
 0x27e   :  { %s699_s18 = scalar_lea.hbm %s977_s5, 32 }
 0x27f   :  { %p700_p5 = scmp.ne.s32.totalorder %s977_s5, %s699_s18  ;;  %p703_p6 = scmp.lt.u32.totalorder %s699_s18, %s977_s5 }
 0x281   :  { %p705_p7 = pnand %p703_p6, %p700_p5 }
 0x283   :  { %708 = shalt.err (!%p705_p7)
}
 0x284   :  { %498 = dma.vmem_to_hbm [thread:$0]  %s496_s0, 32, %s977_s5, [#allocation6]  }
 0x285   :  { %709 = dma.done.wait [#allocation6], 32  }
 0x286   :  { %710 = vsyncadd [#allocation6], 4294967264 }
 0x287   :  { %502 = vsyncpa [#allocation6], 1 }

</bundles_post_ra>
